<compile_context>
chip_gen: v7x
topology: tpu7x:2x2x1
jax: 0.10.0
libtpu: 0.0.40
codegen_flags: <defaults>
</compile_context>

<pallas_src>
import jax
import jax.numpy as jnp
from jax import lax
from jax.experimental import pallas as pl
from jax.experimental.pallas import tpu as pltpu


NUM_AGENTS = 5
STATE_DIM = 20
HIDDEN = 128
BATCH = 128


def _mixing_kernel(s_ref, q_ref, wf_ref, bf_ref, ws_ref, bs_ref, out_ref):
    # Fused first layers of both hyper-nets: one bf16 (B,D)x(D,2H) MXU pass.
    h = jnp.dot(s_ref[...], wf_ref[...], preferred_element_type=jnp.float32)
    h = jnp.maximum(h + bf_ref[...], 0.0)                       # (B, 2H) f32
    h = h.astype(jnp.bfloat16)

    hidden = h.shape[1] // 2                                    # 128 -> lane-aligned
    # Second layers: two small bf16 dots on the aligned halves of h.
    w1 = jnp.abs(jnp.dot(h[:, :hidden], ws_ref[0],
                         preferred_element_type=jnp.float32) + bs_ref[0])   # (B, A)
    w2 = jnp.abs(jnp.dot(h[:, hidden:], ws_ref[1],
                         preferred_element_type=jnp.float32) + bs_ref[1])   # (B, A)

    # a[j] = sum_k w1[j,k] * q[j,k]: tiny reduce-dot so the result lands
    # lane-oriented (a row) without an XLU transpose of a column.
    p = w1 * q_ref[...]                                         # (B, A) f32
    ones = jnp.ones((8, p.shape[1]), jnp.float32)
    a_row = lax.dot_general(ones, p, (((1,), (1,)), ((), ())),
                            preferred_element_type=jnp.float32)[0:1, :]     # (1, B)

    ssum = jnp.sum(w2, axis=1, keepdims=True)                   # (B, 1) row-reduce

    # out[i, j] = a[j] + sum(w2[i])  -- the PyTorch (B,) + (B,1) broadcast.
    out_ref[...] = a_row + ssum                                 # (B, B) VPU add


def fuse_params(p):
    """Pack the 8 per-layer tensors into 4 fused inputs. Call ONCE at init."""
    return dict(
        w_first=jnp.concatenate([p["w1a"], p["w2a"]], axis=1).astype(jnp.bfloat16),  # (D, 2H)
        b_first=jnp.concatenate([p["b1a"], p["b2a"]], axis=1),                       # (1, 2H) f32
        w_second=jnp.stack([p["w1b"], p["w2b"]], axis=0).astype(jnp.bfloat16),       # (2, H, A)
        b_second=jnp.stack([p["b1b"], p["b2b"]], axis=0),                            # (2, 1, A) f32
    )


def mixing_network(states, local_qs, fused):
    """Forward pass of MixingNetwork. Returns (B, B) exactly like the PyTorch code."""
    B, D = states.shape
    if local_qs.ndim == 3:
        local_qs = local_qs.reshape(B, -1)                      # (B, A)
    A = local_qs.shape[1]
    H2 = fused["w_first"].shape[1]

    args = (states.astype(jnp.bfloat16),                        # bf16 halves the states DMA
            local_qs.astype(jnp.float32),
            fused["w_first"], fused["b_first"],
            fused["w_second"], fused["b_second"])

    flops = 2 * (B * D * H2 + 2 * B * (H2 // 2) * A + 8 * B * A) + 3 * B * H2
    bytes_accessed = sum(int(x.size) * x.dtype.itemsize for x in args) + B * B * 4

    vmem = pltpu.MemorySpace.VMEM
    return pl.pallas_call(
        _mixing_kernel,
        out_shape=jax.ShapeDtypeStruct((B, B), jnp.float32),
        in_specs=[pl.BlockSpec(memory_space=vmem) for _ in args],
        out_specs=pl.BlockSpec(memory_space=vmem),
        cost_estimate=pl.CostEstimate(flops=flops, transcendentals=0,
                                      bytes_accessed=bytes_accessed),
    )(*args)


def init_params(key, state_dim=STATE_DIM, hidden=HIDDEN, num_agents=NUM_AGENTS):
    """PyTorch-Linear-like uniform init; weights stored (in, out), f32 masters."""
    keys = jax.random.split(key, 8)

    def lin(kw, kb, fan_in, fan_out):
        bound = 1.0 / jnp.sqrt(fan_in)
        w = jax.random.uniform(kw, (fan_in, fan_out), jnp.float32, -bound, bound)
        b = jax.random.uniform(kb, (1, fan_out), jnp.float32, -bound, bound)
        return w, b

    w1a, b1a = lin(keys[0], keys[1], state_dim, hidden)
    w1b, b1b = lin(keys[2], keys[3], hidden, num_agents)
    w2a, b2a = lin(keys[4], keys[5], state_dim, hidden)
    w2b, b2b = lin(keys[6], keys[7], hidden, num_agents)
    return dict(w1a=w1a, b1a=b1a, w1b=w1b, b1b=b1b,
                w2a=w2a, b2a=b2a, w2b=w2b, b2b=b2b)


def _reference(states, local_qs, p):
    """Pure-JAX f32 reference mirroring the PyTorch forward exactly."""
    q = local_qs.reshape(states.shape[0], -1)
    h1 = jnp.maximum(states @ p["w1a"] + p["b1a"], 0.0)
    w1 = jnp.abs(h1 @ p["w1b"] + p["b1b"])
    h2 = jnp.maximum(states @ p["w2a"] + p["b2a"], 0.0)
    w2 = jnp.abs(h2 @ p["w2b"] + p["b2b"])
    a = jnp.einsum("bq,bq->b", w1, q)                           # (B,)
    ssum = jnp.sum(w2, axis=1, keepdims=True)                   # (B, 1)
    return a + ssum                                             # broadcasts to (B, B)


if __name__ == "__main__":
    key = jax.random.PRNGKey(0)
    k_params, k_state, k_q = jax.random.split(key, 3)

    params = init_params(k_params)
    fused = fuse_params(params)          # hoisted: fused once, reused every forward

    mock_global_state = jax.random.normal(k_state, (BATCH, STATE_DIM), jnp.float32)
    mock_local_qs = jax.random.normal(k_q, (BATCH, NUM_AGENTS, 1), jnp.float32)

    mixed_qs = mixing_network(mock_global_state, mock_local_qs, fused)
    mixed_qs = jax.block_until_ready(mixed_qs)

    ref = _reference(mock_global_state, mock_local_qs, params)
    assert mixed_qs.shape == (BATCH, BATCH), mixed_qs.shape
    # bf16 hyper-net matmuls in the kernel -> looser tolerance vs f32 reference.
    assert jnp.allclose(mixed_qs, ref, atol=5e-2, rtol=5e-2), "mismatch vs reference"

    print("KERNEL_OK")
</pallas_src>

<mosaic_0001>
module attributes {stable_mosaic.version = 11 : i64} {
  func.func @_mixing_kernel(%arg0: memref<128x20xbf16, #tpu.memory_space<vmem>>, %arg1: memref<128x5xf32, #tpu.memory_space<vmem>>, %arg2: memref<20x256xbf16, #tpu.memory_space<vmem>>, %arg3: memref<1x256xf32, #tpu.memory_space<vmem>>, %arg4: memref<2x128x5xbf16, #tpu.memory_space<vmem>>, %arg5: memref<2x1x5xf32, #tpu.memory_space<vmem>>, %arg6: memref<128x128xf32, #tpu.memory_space<vmem>>) attributes {dimension_semantics = [], scalar_prefetch = 0 : i64, scratch_operands = 0 : i64, tpu.core_type = #tpu.core_type<tc>} {
    %c0 = arith.constant 0 : index
    %c0_0 = arith.constant 0 : index
    %0 = vector.load %arg0[%c0, %c0_0] : memref<128x20xbf16, #tpu.memory_space<vmem>>, vector<128x20xbf16>
    %c0_1 = arith.constant 0 : index
    %c0_2 = arith.constant 0 : index
    %1 = vector.load %arg2[%c0_1, %c0_2] : memref<20x256xbf16, #tpu.memory_space<vmem>>, vector<20x256xbf16>
    %cst = arith.constant dense<0.000000e+00> : vector<128x256xf32>
    %2 = tpu.matmul %0, %1, %cst {dimension_numbers = #tpu.dot_dimension_numbers<[1], [0], [0], [1], [0, 0, 1, 1], [], []>} : vector<128x20xbf16>, vector<20x256xbf16>, vector<128x256xf32> -> vector<128x256xf32>
    %c0_3 = arith.constant 0 : index
    %c0_4 = arith.constant 0 : index
    %3 = vector.load %arg3[%c0_3, %c0_4] : memref<1x256xf32, #tpu.memory_space<vmem>>, vector<1x256xf32>
    %4 = vector.broadcast %3 : vector<1x256xf32> to vector<128x256xf32>
    %5 = arith.addf %2, %4 : vector<128x256xf32>
    %cst_5 = arith.constant 0.000000e+00 : f32
    %6 = vector.broadcast %cst_5 : f32 to vector<128x256xf32>
    %7 = arith.maximumf %5, %6 : vector<128x256xf32>
    %8 = arith.truncf %7 : vector<128x256xf32> to vector<128x256xbf16>
    %9 = vector.extract_strided_slice %8 {offsets = [0, 0], sizes = [128, 128], strides = [1, 1]} : vector<128x256xbf16> to vector<128x128xbf16>
    %c0_6 = arith.constant 0 : index
    %c0_7 = arith.constant 0 : index
    %c0_8 = arith.constant 0 : index
    %10 = vector.load %arg4[%c0_6, %c0_7, %c0_8] : memref<2x128x5xbf16, #tpu.memory_space<vmem>>, vector<1x128x5xbf16>
    %11 = vector.shape_cast %10 : vector<1x128x5xbf16> to vector<128x5xbf16>
    %cst_9 = arith.constant dense<0.000000e+00> : vector<128x5xf32>
    %12 = tpu.matmul %9, %11, %cst_9 {dimension_numbers = #tpu.dot_dimension_numbers<[1], [0], [0], [1], [0, 0, 1, 1], [], []>} : vector<128x128xbf16>, vector<128x5xbf16>, vector<128x5xf32> -> vector<128x5xf32>
    %c0_10 = arith.constant 0 : index
    %c0_11 = arith.constant 0 : index
    %c0_12 = arith.constant 0 : index
    %13 = vector.load %arg5[%c0_10, %c0_11, %c0_12] : memref<2x1x5xf32, #tpu.memory_space<vmem>>, vector<1x1x5xf32>
    %14 = vector.shape_cast %13 : vector<1x1x5xf32> to vector<1x5xf32>
    %15 = vector.broadcast %14 : vector<1x5xf32> to vector<128x5xf32>
    %16 = arith.addf %12, %15 : vector<128x5xf32>
    %17 = math.absf %16 : vector<128x5xf32>
    %18 = vector.extract_strided_slice %8 {offsets = [0, 128], sizes = [128, 128], strides = [1, 1]} : vector<128x256xbf16> to vector<128x128xbf16>
    %c1 = arith.constant 1 : index
    %c0_13 = arith.constant 0 : index
    %c0_14 = arith.constant 0 : index
    %19 = vector.load %arg4[%c1, %c0_13, %c0_14] : memref<2x128x5xbf16, #tpu.memory_space<vmem>>, vector<1x128x5xbf16>
    %20 = vector.shape_cast %19 : vector<1x128x5xbf16> to vector<128x5xbf16>
    %cst_15 = arith.constant dense<0.000000e+00> : vector<128x5xf32>
    %21 = tpu.matmul %18, %20, %cst_15 {dimension_numbers = #tpu.dot_dimension_numbers<[1], [0], [0], [1], [0, 0, 1, 1], [], []>} : vector<128x128xbf16>, vector<128x5xbf16>, vector<128x5xf32> -> vector<128x5xf32>
    %c1_16 = arith.constant 1 : index
    %c0_17 = arith.constant 0 : index
    %c0_18 = arith.constant 0 : index
    %22 = vector.load %arg5[%c1_16, %c0_17, %c0_18] : memref<2x1x5xf32, #tpu.memory_space<vmem>>, vector<1x1x5xf32>
    %23 = vector.shape_cast %22 : vector<1x1x5xf32> to vector<1x5xf32>
    %24 = vector.broadcast %23 : vector<1x5xf32> to vector<128x5xf32>
    %25 = arith.addf %21, %24 : vector<128x5xf32>
    %26 = math.absf %25 : vector<128x5xf32>
    %c0_19 = arith.constant 0 : index
    %c0_20 = arith.constant 0 : index
    %27 = vector.load %arg1[%c0_19, %c0_20] : memref<128x5xf32, #tpu.memory_space<vmem>>, vector<128x5xf32>
    %28 = arith.mulf %17, %27 : vector<128x5xf32>
    %cst_21 = arith.constant 1.000000e+00 : f32
    %29 = vector.broadcast %cst_21 : f32 to vector<8x5xf32>
    %cst_22 = arith.constant dense<0.000000e+00> : vector<8x128xf32>
    %30 = tpu.matmul %29, %28, %cst_22 {dimension_numbers = #tpu.dot_dimension_numbers<[1], [1], [0], [0], [0, 0, 1, 0], [], []>} : vector<8x5xf32>, vector<128x5xf32>, vector<8x128xf32> -> vector<8x128xf32>
    %31 = vector.extract_strided_slice %30 {offsets = [0, 0], sizes = [1, 128], strides = [1, 1]} : vector<8x128xf32> to vector<1x128xf32>
    %cst_23 = arith.constant dense<0.000000e+00> : vector<128xf32>
    %32 = vector.multi_reduction <add>, %26, %cst_23 [1] : vector<128x5xf32> to vector<128xf32>
    %33 = vector.shape_cast %32 : vector<128xf32> to vector<128x1xf32>
    %34 = vector.broadcast %31 : vector<1x128xf32> to vector<128x128xf32>
    %35 = vector.broadcast %33 : vector<128x1xf32> to vector<128x128xf32>
    %36 = arith.addf %34, %35 : vector<128x128xf32>
    %c0_24 = arith.constant 0 : index
    %c0_25 = arith.constant 0 : index
    %37 = vector.load %arg6[%c0_24, %c0_25] : memref<128x128xf32, #tpu.memory_space<vmem>>, vector<128x128xf32>
    tpu.vector_store %arg6[%c0_24, %c0_25], %36 {strides = array<i32>} : memref<128x128xf32, #tpu.memory_space<vmem>>, vector<128x128xf32>,
    return
  }
}

</mosaic_0001>

<bundles_post_ra>
// kernel: tpu_custom_call.1
= control target key start
LH: loop header
LB: loop body
LE: loop exit
PB: predicated region body
PF: predicated region fallthrough
CT: control target
= control target key end

     0   :  { %vm136_vm0 = vcmask 1041408   ;;  %v1242_v3 = vmov 0   ;;  %vm111_vm1 = vcmask 162816   ;;  %s1589_s0 = inlined_call_operand.vmem [shape: bf16[128,20], index: 0, kind: input, shape index: {}]   ;;  %s1590_s1 = inlined_call_operand.vmem [shape: f32[128,5], index: 1, kind: input, shape index: {}]   ;;  %s1591_s2 = inlined_call_operand.vmem [shape: bf16[20,256], index: 2, kind: input, shape index: {}]   ;;  %s1592_s3 = inlined_call_operand.vmem [shape: f32[1,256], index: 3, kind: input, shape index: {}]   ;;  %s1593_s4 = inlined_call_operand.vmem [shape: bf16[2,128,5], index: 4, kind: input, shape index: {}]   ;;  %s1594_s5 = inlined_call_operand.vmem [shape: f32[2,1,5], index: 5, kind: input, shape index: {}]   ;;  %s1595_s6 = inlined_call_operand.hbm [shape: f32[128,128], index: 6, kind: output, shape index: {}]  }
   0x1   :  { %v1189_v0 = vld [vmem:[%s1591_s2 + $0x4] ss:$8 sps:$4 sm:$0xff]   ;;  %v1191_v1 = vld [vmem:[%s1591_s2] ss:$8 sps:$4 sm:$0xff]   ;;  %v43_v2 = vld [vmem:[%s1591_s2 + $0x10] sm:$0x33]  ;;  %175 = vmatprep.mubr.bf16.mxu0 %v1242_v3 }
   0x2   :  { %143 = vmatprep.subr.bf16.mxu0 %v1189_v0  ;;  %v939_v4 = vcombine.high %v43_v2, %v43_v2  ;;  %v938_v5 = vcombine.low %v43_v2, %v43_v2  ;;  %v1194_v7 = vld [vmem:[%s1589_s0] sm:$0xff]   ;;  %v1203_v9 = vld [vmem:[%s1593_s4 + $0x8] sm:$0xff]   ;;  %v1204_v11 = vld [vmem:[%s1593_s4 + $0x10] sm:$0xff]  }
   0x3   :  { %144 = vmatpush1.bf16.msra.mxu0 %v1191_v1  ;;  %v1202_v8 = vld [vmem:[%s1593_s4] sm:$0xff]   ;;  %v1195_v10 = vld [vmem:[%s1589_s0 + $0x8] sm:$0xff]   ;;  %v1205_v12 = vld [vmem:[%s1593_s4 + $0x18] sm:$0xff]  }
   0x4   :  { %940 = vmatprep.subr.msk.bf16.mxu0 %vm136_vm0, %v939_v4  ;;  %v138_v6 = vsel %vm136_vm0, %v938_v5, 0  ;;  %1050 = vmatprep.subr.bf16.mxu1 %v1202_v8  ;;  %v1196_v13 = vld [vmem:[%s1589_s0 + $0x10] sm:$0xff]  }
   0x5   :  { %1051 = vmatpush3.bf16.msra.mxu1 %v1202_v8 }
   0x6   :  { %1052 = vmatprep.subr.bf16.mxu1 %v1203_v9 }
   0x7   :  { %146 = vmatpush1.bf16.msra.mxu0 %v138_v6 }
   0x9   :  { %1053 = vmatpush3.bf16.msra.mxu1 %v1203_v9 }
   0xa   :  { %941 = vmatmul.mubr.msk.bf16.vlgmr.msra.gmra.mrb[0].mxu0 %vm111_vm1, %v1194_v7  ;;  %1054 = vmatprep.subr.bf16.mxu1 %v1204_v11 }
   0xb   :  { %185 = vmatprep.mubr.bf16.mxu0 %v1242_v3 }
   0xd   :  { %1055 = vmatpush3.bf16.msra.mxu1 %v1204_v11 }
   0xe   :  { %1056 = vmatprep.subr.bf16.mxu1 %v1205_v12 }
  0x12   :  { %942 = vmatmul.mubr.msk.bf16.gmra.mrb[4].mxu0 %vm111_vm1, %v1195_v10 }
  0x13   :  { %195 = vmatprep.mubr.bf16.mxu0 %v1242_v3 }
  0x14   :  { %11 = vsyncpa [#allocation3], 0  ;;  %1057 = vmatpush3.bf16.msra.mxu1 %v1205_v12  ;;  %v1197_v14 = vld [vmem:[%s1589_s0 + $0x18] sm:$0xff]   ;;  %v1198_v15 = vld [vmem:[%s1589_s0 + $0x20] sm:$0xff]   ;;  %v46_v24 = vlaneseq  ;;  %vm1244_vm2 = vmmov 0   ;;  %vm706_vm3 = vcmask 39936  }
  0x15   :  { %v1199_v16 = vld [vmem:[%s1589_s0 + $0x28] sm:$0xff]   ;;  %v1200_v17 = vld [vmem:[%s1589_s0 + $0x30] sm:$0xff]   ;;  %v1201_v18 = vld [vmem:[%s1589_s0 + $0x38] sm:$0xff]  }
  0x16   :  { %v1206_v19 = vld [vmem:[%s1593_s4 + $0x20] sm:$0xff]   ;;  %v1207_v20 = vld [vmem:[%s1593_s4 + $0x28] sm:$0xff]   ;;  %v1208_v21 = vld [vmem:[%s1593_s4 + $0x30] sm:$0xff]   ;;  %v1353_v25 = vshrl.u32 %v46_v24, 7 }
  0x17   :  { %1058 = vmatprep.subr.bf16.mxu1 %v1206_v19  ;;  %v1209_v22 = vld [vmem:[%s1593_s4 + $0x38] sm:$0xff]   ;;  %v1210_v23 = vld [vmem:[%s1593_s4 + $0x40] sm:$0xff]   ;;  %v1211_v58 = vld [vmem:[%s1593_s4 + $0x48] sm:$0xff]  }
  0x18   :  { %1059 = vmatpush3.bf16.msra.mxu1 %v1206_v19  ;;  %v48_v26 = vsub.s32 0, %v1353_v25  ;;  %v44_v27 = vld [vmem:[%s1592_s3] sm:$0x3]  ;;  %v52_v28 = vsub.s32 1, %v1353_v25  ;;  %v1213_v10 = vld [vmem:[%s1593_s4 + $0x58] sm:$0xff]   ;;  %vm1455_vm4 = vmpackc.low %vm706_vm3, %vm706_vm3 }
  0x19   :  { %1060 = vmatprep.subr.bf16.mxu1 %v1207_v20  ;;  %v1214_v19 = vld [vmem:[%s1593_s4 + $0x60] sm:$0xff]  }
  0x1a   :  { %943 = vmatmul.mubr.msk.bf16.gmra.mrb[8].mxu0 %vm111_vm1, %v1196_v13  ;;  %v1362_v29 = vrot.slane %v44_v27, %v48_v26  ;;  %v1364_v30 = vrot.slane %v44_v27, %v52_v28  ;;  %v1215_v28 = vld [vmem:[%s1593_s4 + $0x68] sm:$0xff]  }
  0x1b   :  { %205 = vmatprep.mubr.bf16.mxu0 %v1242_v3 }
  0x1c   :  { %1061 = vmatpush3.bf16.msra.mxu1 %v1207_v20 }
  0x1d   :  { %1062 = vmatprep.subr.bf16.mxu1 %v1208_v21 }
  0x20   :  { %1063 = vmatpush3.bf16.msra.mxu1 %v1208_v21 }
  0x21   :  { %1064 = vmatprep.subr.bf16.mxu1 %v1209_v22 }
  0x22   :  { %944 = vmatmul.mubr.msk.bf16.gmra.mrb[12].mxu0 %vm111_vm1, %v1197_v14 }
  0x23   :  { %215 = vmatprep.mubr.bf16.mxu0 %v1242_v3 }
  0x24   :  { %1065 = vmatpush3.bf16.msra.mxu1 %v1209_v22 }
  0x25   :  { %1082 = vmatprep.subr.bf16.mxu1 %v1210_v23 }
  0x2a   :  { %945 = vmatmul.mubr.msk.bf16.gmra.mrb[16].mxu0 %vm111_vm1, %v1198_v15 }
  0x2b   :  { %225 = vmatprep.mubr.bf16.mxu0 %v1242_v3 }
  0x32   :  { %946 = vmatmul.mubr.msk.bf16.gmra.mrb[20].mxu0 %vm111_vm1, %v1199_v16 }
  0x33   :  { %235 = vmatprep.mubr.bf16.mxu0 %v1242_v3 }
  0x3a   :  { %947 = vmatmul.mubr.msk.bf16.gmra.mrb[24].mxu0 %vm111_vm1, %v1200_v17 }
  0x3b   :  { %245 = vmatprep.mubr.bf16.mxu0 %v1242_v3  ;;  %v1212_v3 = vld [vmem:[%s1593_s4 + $0x50] sm:$0xff]  }
  0x42   :  { %948 = vmatmul.mubr.msk.bf16.gmra.mrb[28].mxu0 %vm111_vm1, %v1201_v18 }
  0xdd   :  { %v177_v31 = vpop.f32.mrb[0].mxu0 }
  0xde   :  { %v178_v32 = vadd.f32 %v177_v31, %v1362_v29  ;;  %v179_v33 = vpop.f32.mrb[1].mxu0 }
  0xdf   :  { %v180_v34 = vadd.f32 %v179_v33, %v1364_v30  ;;  %v181_v35 = vpop.f32.mrb[2].mxu0 }
  0xe0   :  { %v182_v36 = vadd.f32 %v181_v35, %v1362_v29  ;;  %v183_v37 = vpop.f32.mrb[3].mxu0  ;;  %v256_v39 = vmax.f32 %v178_v32, 0.0 }
  0xe1   :  { %v184_v38 = vadd.f32 %v183_v37, %v1364_v30  ;;  %v257_v41 = vmax.f32 %v180_v34, 0.0 }
  0xe2   :  { %v258_v40 = vmax.f32 %v182_v36, 0.0 }
  0xe3   :  { %v259_v42 = vmax.f32 %v184_v38, 0.0 }
  0xe4   :  { %v288_v43 = vpack.c.bf16 %v258_v40, %v256_v39  ;;  %v1216_v39 = vld [vmem:[%s1593_s4 + $0x70] sm:$0xff]  }
  0xe5   :  { %v1370_v44 = vpack.c.bf16 %v259_v42, %v257_v41  ;;  %v187_v45 = vpop.f32.mrb[4].mxu0 }
  0xe6   :  { %v188_v46 = vadd.f32 %v187_v45, %v1362_v29  ;;  %v189_v47 = vpop.f32.mrb[5].mxu0  ;;  %1066 = vmatprep.mubr.bf16.mxu1 %v288_v43 }
  0xe7   :  { %v190_v48 = vadd.f32 %v189_v47, %v1364_v30  ;;  %v191_v49 = vpop.f32.mrb[6].mxu0  ;;  %v1217_v47 = vld [vmem:[%s1593_s4 + $0x78] sm:$0xff]  }
  0xe8   :  { %v192_v50 = vadd.f32 %v191_v49, %v1362_v29  ;;  %v193_v51 = vpop.f32.mrb[7].mxu0  ;;  %v260_v53 = vmax.f32 %v188_v46, 0.0 }
  0xe9   :  { %v194_v52 = vadd.f32 %v193_v51, %v1364_v30  ;;  %v261_v55 = vmax.f32 %v190_v48, 0.0 }
  0xea   :  { %v262_v54 = vmax.f32 %v192_v50, 0.0 }
  0xeb   :  { %v263_v56 = vmax.f32 %v194_v52, 0.0 }
  0xec   :  { %v290_v57 = vpack.c.bf16 %v262_v54, %v260_v53 }
  0xed   :  { %v1379_v59 = vpack.c.bf16 %v263_v56, %v261_v55  ;;  %v197_v60 = vpop.f32.mrb[8].mxu0 }
  0xee   :  { %v198_v61 = vadd.f32 %v197_v60, %v1362_v29  ;;  %v199_v62 = vpop.f32.mrb[9].mxu0  ;;  %1067 = vmatmul.mubr.bf16.vlgmr.msra.gmra.mrb[0].mxu1 %v290_v57 }
  0xef   :  { %v200_v63 = vadd.f32 %v199_v62, %v1364_v30  ;;  %v201_v0 = vpop.f32.mrb[10].mxu0  ;;  %1083 = vmatpush3.bf16.msra.mxu1 %v1210_v23 }
  0xf0   :  { %v202_v1 = vadd.f32 %v201_v0, %v1362_v29  ;;  %v203_v2 = vpop.f32.mrb[11].mxu0  ;;  %1084 = vmatprep.subr.bf16.mxu1 %v1211_v58  ;;  %v264_v5 = vmax.f32 %v198_v61, 0.0 }
  0xf1   :  { %v204_v4 = vadd.f32 %v203_v2, %v1364_v30  ;;  %v265_v7 = vmax.f32 %v200_v63, 0.0 }
  0xf2   :  { %v266_v6 = vmax.f32 %v202_v1, 0.0 }
  0xf3   :  { %v267_v8 = vmax.f32 %v204_v4, 0.0  ;;  %1085 = vmatpush3.bf16.msra.mxu1 %v1211_v58 }
  0xf4   :  { %v292_v9 = vpack.c.bf16 %v266_v6, %v264_v5  ;;  %1086 = vmatprep.subr.bf16.mxu1 %v1212_v3 }
  0xf5   :  { %v1391_v11 = vpack.c.bf16 %v267_v8, %v265_v7  ;;  %v207_v12 = vpop.f32.mrb[12].mxu0 }
  0xf6   :  { %v208_v13 = vadd.f32 %v207_v12, %v1362_v29  ;;  %v209_v14 = vpop.f32.mrb[13].mxu0  ;;  %1070 = vmatprep.mubr.bf16.mxu1 %v292_v9 }
  0xf7   :  { %v210_v15 = vadd.f32 %v209_v14, %v1364_v30  ;;  %v211_v16 = vpop.f32.mrb[14].mxu0  ;;  %1087 = vmatpush3.bf16.msra.mxu1 %v1212_v3 }
  0xf8   :  { %v212_v17 = vadd.f32 %v211_v16, %v1362_v29  ;;  %v213_v18 = vpop.f32.mrb[15].mxu0  ;;  %1088 = vmatprep.subr.bf16.mxu1 %v1213_v10  ;;  %v268_v21 = vmax.f32 %v208_v13, 0.0 }
  0xf9   :  { %v214_v20 = vadd.f32 %v213_v18, %v1364_v30  ;;  %v269_v23 = vmax.f32 %v210_v15, 0.0 }
  0xfa   :  { %v270_v22 = vmax.f32 %v212_v17, 0.0 }
  0xfb   :  { %v271_v24 = vmax.f32 %v214_v20, 0.0  ;;  %1089 = vmatpush3.bf16.msra.mxu1 %v1213_v10 }
  0xfc   :  { %v294_v27 = vpack.c.bf16 %v270_v22, %v268_v21  ;;  %1090 = vmatprep.subr.bf16.mxu1 %v1214_v19 }
  0xfd   :  { %v1403_v31 = vpack.c.bf16 %v271_v24, %v269_v23  ;;  %v217_v32 = vpop.f32.mrb[16].mxu0 }
  0xfe   :  { %v218_v33 = vadd.f32 %v217_v32, %v1362_v29  ;;  %v219_v34 = vpop.f32.mrb[17].mxu0  ;;  %1071 = vmatmul.mubr.bf16.gmra.mrb[4].mxu1 %v294_v27 }
  0xff   :  { %v220_v35 = vadd.f32 %v219_v34, %v1364_v30  ;;  %v221_v36 = vpop.f32.mrb[18].mxu0  ;;  %1091 = vmatpush3.bf16.msra.mxu1 %v1214_v19 }
 0x100   :  { %v222_v37 = vadd.f32 %v221_v36, %v1362_v29  ;;  %v223_v38 = vpop.f32.mrb[19].mxu0  ;;  %1092 = vmatprep.subr.bf16.mxu1 %v1215_v28  ;;  %v272_v41 = vmax.f32 %v218_v33, 0.0 }
 0x101   :  { %v224_v40 = vadd.f32 %v223_v38, %v1364_v30  ;;  %v273_v43 = vmax.f32 %v220_v35, 0.0 }
 0x102   :  { %v274_v42 = vmax.f32 %v222_v37, 0.0 }
 0x103   :  { %v275_v45 = vmax.f32 %v224_v40, 0.0  ;;  %1093 = vmatpush3.bf16.msra.mxu1 %v1215_v28 }
 0x104   :  { %v296_v46 = vpack.c.bf16 %v274_v42, %v272_v41  ;;  %1094 = vmatprep.subr.bf16.mxu1 %v1216_v39  ;;  %v677_v41 = vld [vmem:[%s1590_s1 + $0x18] sm:$0xff] }
 0x105   :  { %v297_v48 = vpack.c.bf16 %v275_v45, %v273_v43  ;;  %v227_v49 = vpop.f32.mrb[20].mxu0  ;;  %v674_v43 = vld [vmem:[%s1590_s1] sm:$0xff] }
 0x106   :  { %v228_v50 = vadd.f32 %v227_v49, %v1362_v29  ;;  %v229_v51 = vpop.f32.mrb[21].mxu0  ;;  %1074 = vmatprep.mubr.bf16.mxu1 %v296_v46  ;;  %v675_v46 = vld [vmem:[%s1590_s1 + $0x8] sm:$0xff] }
 0x107   :  { %v230_v52 = vadd.f32 %v229_v51, %v1364_v30  ;;  %v231_v53 = vpop.f32.mrb[22].mxu0  ;;  %1095 = vmatpush3.bf16.msra.mxu1 %v1216_v39  ;;  %v676_v39 = vld [vmem:[%s1590_s1 + $0x10] sm:$0xff] }
 0x108   :  { %v232_v54 = vadd.f32 %v231_v53, %v1362_v29  ;;  %v233_v55 = vpop.f32.mrb[23].mxu0  ;;  %1096 = vmatprep.subr.bf16.mxu1 %v1217_v47  ;;  %v276_v57 = vmax.f32 %v228_v50, 0.0 }
 0x109   :  { %v234_v56 = vadd.f32 %v233_v55, %v1364_v30  ;;  %v277_v60 = vmax.f32 %v230_v52, 0.0 }
 0x10a   :  { %v278_v58 = vmax.f32 %v232_v54, 0.0 }
 0x10b   :  { %v279_v61 = vmax.f32 %v234_v56, 0.0  ;;  %1097 = vmatpush3.bf16.msra.mxu1 %v1217_v47 }
 0x10c   :  { %v298_v62 = vpack.c.bf16 %v278_v58, %v276_v57 }
 0x10d   :  { %v299_v63 = vpack.c.bf16 %v279_v61, %v277_v60  ;;  %v237_v0 = vpop.f32.mrb[24].mxu0 }
 0x10e   :  { %v238_v1 = vadd.f32 %v237_v0, %v1362_v29  ;;  %v239_v2 = vpop.f32.mrb[25].mxu0  ;;  %1075 = vmatmul.mubr.bf16.gmra.mrb[8].mxu1 %v298_v62  ;;  %v680_v0 = vld [vmem:[%s1590_s1 + $0x30] sm:$0xff] }
 0x10f   :  { %v240_v3 = vadd.f32 %v239_v2, %v1364_v30  ;;  %v241_v4 = vpop.f32.mrb[26].mxu0  ;;  %v681_v2 = vld [vmem:[%s1590_s1 + $0x38] sm:$0xff] }
 0x110   :  { %v242_v5 = vadd.f32 %v241_v4, %v1362_v29  ;;  %v243_v6 = vpop.f32.mrb[27].mxu0  ;;  %v280_v8 = vmax.f32 %v238_v1, 0.0  ;;  %v678_v4 = vld [vmem:[%s1590_s1 + $0x20] sm:$0xff] }
 0x111   :  { %v244_v7 = vadd.f32 %v243_v6, %v1364_v30  ;;  %v281_v10 = vmax.f32 %v240_v3, 0.0  ;;  %v679_v6 = vld [vmem:[%s1590_s1 + $0x28] sm:$0xff] }
 0x112   :  { %v282_v9 = vmax.f32 %v242_v5, 0.0 }
 0x113   :  { %v283_v12 = vmax.f32 %v244_v7, 0.0 }
 0x114   :  { %v300_v13 = vpack.c.bf16 %v282_v9, %v280_v8 }
 0x115   :  { %v301_v14 = vpack.c.bf16 %v283_v12, %v281_v10  ;;  %v247_v15 = vpop.f32.mrb[28].mxu0 }
 0x116   :  { %v248_v16 = vadd.f32 %v247_v15, %v1362_v29  ;;  %v249_v17 = vpop.f32.mrb[29].mxu0  ;;  %1078 = vmatprep.mubr.bf16.mxu1 %v300_v13 }
 0x117   :  { %v250_v18 = vadd.f32 %v249_v17, %v1364_v30  ;;  %v251_v19 = vpop.f32.mrb[30].mxu0 }
 0x118   :  { %v252_v20 = vadd.f32 %v251_v19, %v1362_v29  ;;  %v253_v21 = vpop.f32.mrb[31].mxu0  ;;  %v284_v23 = vmax.f32 %v248_v16, 0.0  ;;  %v1243_v29 = vmov 0.0|0.0  }
 0x119   :  { %v254_v22 = vadd.f32 %v253_v21, %v1364_v30  ;;  %v285_v27 = vmax.f32 %v250_v18, 0.0  ;;  %1149 = vmatprep.subr.bf16.mxu0 %v1243_v29  ;;  %v1245_v30 = vmov 0.0  }
 0x11a   :  { %v286_v24 = vmax.f32 %v252_v20, 0.0  ;;  %1146 = vmatprep.mubr.msk.f32.mxu0 %vm1244_vm2, %v1245_v30  ;;  %v683_v30 = vld [vmem:[%s1590_s1 + $0x48] sm:$0xff] }
 0x11b   :  { %v287_v28 = vmax.f32 %v254_v22, 0.0 }
 0x11c   :  { %v302_v32 = vpack.c.bf16 %v286_v24, %v284_v23  ;;  %v684_v23 = vld [vmem:[%s1590_s1 + $0x50] sm:$0xff] }
 0x11d   :  { %v303_v33 = vpack.c.bf16 %v287_v28, %v285_v27  ;;  %v685_v27 = vld [vmem:[%s1590_s1 + $0x58] sm:$0xff] }
 0x11e   :  { %1079 = vmatmul.mubr.bf16.gmra.mrb[12].mxu1 %v302_v32  ;;  %v682_v32 = vld [vmem:[%s1590_s1 + $0x40] sm:$0xff] }
 0x11f   :  { %1098 = vmatprep.mubr.bf16.mxu1 %v1370_v44  ;;  %v1435_v44 = vld [vmem:[%s1594_s5] ss:$0 sm:$0xff] }
 0x126   :  { %1099 = vmatmul.mubr.bf16.vlgmr.msra.gmra.mrb[16].mxu1 %v1379_v59 }
 0x127   :  { %1102 = vmatprep.mubr.bf16.mxu1 %v1391_v11 }
 0x12e   :  { %1103 = vmatmul.mubr.bf16.gmra.mrb[20].mxu1 %v1403_v31 }
 0x12f   :  { %1106 = vmatprep.mubr.bf16.mxu1 %v297_v48 }
 0x136   :  { %1107 = vmatmul.mubr.bf16.gmra.mrb[24].mxu1 %v299_v63 }
 0x137   :  { %1110 = vmatprep.mubr.bf16.mxu1 %v301_v14 }
 0x13e   :  { %1111 = vmatmul.mubr.bf16.gmra.mrb[28].mxu1 %v303_v33 }
 0x1c1   :  { %v1068_v59 = vpop.f32.mrb[0].mxu1 }
 0x1c2   :  { %v418_v11 = vadd.f32 %v1068_v59, %v1435_v44  ;;  %v409_v34 = vpop.f32.mrb[1].mxu1 }
 0x1c3   :  { %v410_v31 = vadd.f32 %v1435_v44, %v409_v34  ;;  %v1069_v35 = vpop.f32.mrb[2].mxu1 }
 0x1c4   :  { %v474_v36 = vand.u32 2147483647, %v418_v11  ;;  %v421_v37 = vadd.f32 %v1069_v35, %v1435_v44  ;;  %v412_v38 = vpop.f32.mrb[3].mxu1 }
 0x1c5   :  { %v472_v40 = vand.u32 2147483647, %v410_v31  ;;  %v413_v42 = vadd.f32 %v1435_v44, %v412_v38 }
 0x1c6   :  { %v475_v45 = vand.u32 2147483647, %v421_v37  ;;  %v692_v48 = vmul.f32 %v676_v39, %v474_v36 }
 0x1c7   :  { %v473_v47 = vand.u32 2147483647, %v413_v42  ;;  %v690_v50 = vmul.f32 %v674_v43, %v472_v40 }
 0x1c8   :  { %v693_v49 = vmul.f32 %v677_v41, %v475_v45 }
 0x1c9   :  { %v691_v51 = vmul.f32 %v675_v46, %v473_v47  ;;  %v688_v47 = vld [vmem:[%s1590_s1 + $0x70] sm:$0xff] }
 0x1ca   :  { %v1154_v52 = vpack.c.bf16 %v693_v49, %v692_v48  ;;  %v689_v49 = vld [vmem:[%s1590_s1 + $0x78] sm:$0xff] }
 0x1cb   :  { %v1150_v54 = vpack.c.bf16 %v691_v51, %v690_v50  ;;  %v686_v51 = vld [vmem:[%s1590_s1 + $0x60] sm:$0xff] }
 0x1cd   :  { %1152 = vmatpush3.bf16.xpose.msk.msra.mxu0 %vm1455_vm4, %v1150_v54  ;;  %v687_v54 = vld [vmem:[%s1590_s1 + $0x68] sm:$0xff]  ;;  %s1247_s1 = smov [#allocation2]  }
 0x1ce   :  { %1153 = vmatprep.subr.bf16.mxu0 %v1243_v29 }
 0x1d1   :  { %v1072_v55 = vpop.f32.mrb[4].mxu1 }
 0x1d2   :  { %v434_v56 = vadd.f32 %v1072_v55, %v1435_v44  ;;  %v425_v57 = vpop.f32.mrb[5].mxu1 }
 0x1d3   :  { %v426_v58 = vadd.f32 %v1435_v44, %v425_v57  ;;  %v1073_v60 = vpop.f32.mrb[6].mxu1 }
 0x1d4   :  { %v478_v61 = vand.u32 2147483647, %v434_v56  ;;  %v437_v62 = vadd.f32 %v1073_v60, %v1435_v44  ;;  %v428_v63 = vpop.f32.mrb[7].mxu1  ;;  %v1528_v56 = vld [vmem:[%s1594_s5 + $0x1] ss:$0 sm:$0xff]  ;;  %s917_s5 = sshll.u32 %s1247_s1, 4  ;;  %s1570_s5 = int_to_ptr.vmem [resolvable:$true] %s917_s5 }
 0x1d5   :  { %v476_v1 = vand.u32 2147483647, %v426_v58  ;;  %v429_v3 = vadd.f32 %v1435_v44, %v428_v63  ;;  %1156 = vmatpush3.bf16.xpose.msk.msra.mxu0 %vm1455_vm4, %v1154_v52  ;;  %s1218_s0 = scalar_lea.vmem %s1570_s5, 2048  ;;  %p1223_p1 = scmp.lt.s32.totalorder %s1570_s5, %s1570_s5 }
 0x1d6   :  { %v479_v5 = vand.u32 2147483647, %v437_v62  ;;  %1157 = vmatprep.subr.bf16.mxu0 %v1243_v29  ;;  %v696_v8 = vmul.f32 %v680_v0, %v478_v61  ;;  %p1219_p0 = scmp.ne.s32.totalorder %s1570_s5, %s1218_s0  ;;  %p1224_p2 = scmp.lt.s32.totalorder %s1218_s0, %s1218_s0 }
 0x1d7   :  { %v477_v7 = vand.u32 2147483647, %v429_v3  ;;  %v694_v10 = vmul.f32 %v678_v4, %v476_v1 }
 0x1d8   :  { %v697_v9 = vmul.f32 %v681_v2, %v479_v5  ;;  %p1225_p3 = por %p1224_p2, %p1223_p1 }
 0x1d9   :  { %v695_v12 = vmul.f32 %v679_v6, %v477_v7 }
 0x1da   :  { %v1162_v13 = vpack.c.bf16 %v697_v9, %v696_v8  ;;  %p1226_p4 = pnand %p1225_p3, %p1219_p0 }
 0x1db   :  { %v1158_v14 = vpack.c.bf16 %v695_v12, %v694_v10 }
 0x1dd   :  { %1160 = vmatpush3.bf16.xpose.msk.msra.mxu0 %vm1455_vm4, %v1158_v14 }
 0x1de   :  { %1161 = vmatprep.subr.bf16.mxu0 %v1243_v29 }
 0x1e1   :  { %v1076_v15 = vpop.f32.mrb[8].mxu1 }
 0x1e2   :  { %v450_v16 = vadd.f32 %v1076_v15, %v1435_v44  ;;  %v441_v17 = vpop.f32.mrb[9].mxu1 }
 0x1e3   :  { %v442_v18 = vadd.f32 %v1435_v44, %v441_v17  ;;  %v1077_v19 = vpop.f32.mrb[10].mxu1 }
 0x1e4   :  { %v482_v20 = vand.u32 2147483647, %v450_v16  ;;  %v453_v21 = vadd.f32 %v1077_v19, %v1435_v44  ;;  %v444_v22 = vpop.f32.mrb[11].mxu1 }
 0x1e5   :  { %v480_v24 = vand.u32 2147483647, %v442_v18  ;;  %v445_v28 = vadd.f32 %v1435_v44, %v444_v22  ;;  %1164 = vmatpush3.bf16.xpose.msk.msra.mxu0 %vm1455_vm4, %v1162_v13 }
 0x1e6   :  { %v483_v33 = vand.u32 2147483647, %v453_v21  ;;  %1165 = vmatprep.subr.bf16.mxu0 %v1243_v29  ;;  %v700_v11 = vmul.f32 %v684_v23, %v482_v20 }
 0x1e7   :  { %v481_v59 = vand.u32 2147483647, %v445_v28  ;;  %v698_v31 = vmul.f32 %v682_v32, %v480_v24 }
 0x1e8   :  { %v701_v34 = vmul.f32 %v685_v27, %v483_v33 }
 0x1e9   :  { %v699_v35 = vmul.f32 %v683_v30, %v481_v59 }
 0x1ea   :  { %v1170_v36 = vpack.c.bf16 %v701_v34, %v700_v11 }
 0x1eb   :  { %v1166_v37 = vpack.c.bf16 %v699_v35, %v698_v31 }
 0x1ed   :  { %1168 = vmatpush3.bf16.xpose.msk.msra.mxu0 %vm1455_vm4, %v1166_v37 }
 0x1ee   :  { %1169 = vmatprep.subr.bf16.mxu0 %v1243_v29 }
 0x1f1   :  { %v1080_v38 = vpop.f32.mrb[12].mxu1 }
 0x1f2   :  { %v466_v39 = vadd.f32 %v1080_v38, %v1435_v44  ;;  %v457_v40 = vpop.f32.mrb[13].mxu1  ;;  %v1246_v38 = vmov 1.0  }
 0x1f3   :  { %v458_v41 = vadd.f32 %v1435_v44, %v457_v40  ;;  %v1081_v42 = vpop.f32.mrb[14].mxu1 }
 0x1f4   :  { %v486_v43 = vand.u32 2147483647, %v466_v39  ;;  %v469_v45 = vadd.f32 %v1081_v42, %v1435_v44  ;;  %v460_v46 = vpop.f32.mrb[15].mxu1 }
 0x1f5   :  { %v484_v48 = vand.u32 2147483647, %v458_v41  ;;  %v461_v50 = vadd.f32 %v1435_v44, %v460_v46  ;;  %1172 = vmatpush3.bf16.xpose.msk.msra.mxu0 %vm1455_vm4, %v1170_v36 }
 0x1f6   :  { %v487_v52 = vand.u32 2147483647, %v469_v45  ;;  %1173 = vmatprep.subr.bf16.mxu0 %v1243_v29  ;;  %v704_v44 = vmul.f32 %v688_v47, %v486_v43 }
 0x1f7   :  { %v485_v55 = vand.u32 2147483647, %v461_v50  ;;  %v702_v58 = vmul.f32 %v686_v51, %v484_v48 }
 0x1f8   :  { %v705_v57 = vmul.f32 %v689_v49, %v487_v52 }
 0x1f9   :  { %v703_v60 = vmul.f32 %v687_v54, %v485_v55  ;;  %v1100_v61 = vpop.f32.mrb[16].mxu1 }
 0x1fa   :  { %v1178_v62 = vpack.c.bf16 %v705_v57, %v704_v44  ;;  %v604_v63 = vadd.f32 %v1100_v61, %v1528_v56  ;;  %v595_v0 = vpop.f32.mrb[17].mxu1 }
 0x1fb   :  { %v1174_v1 = vpack.c.bf16 %v703_v60, %v702_v58  ;;  %v596_v2 = vadd.f32 %v1528_v56, %v595_v0  ;;  %v1101_v3 = vpop.f32.mrb[18].mxu1 }
 0x1fc   :  { %v660_v4 = vand.u32 2147483647, %v604_v63  ;;  %v607_v5 = vadd.f32 %v1101_v3, %v1528_v56  ;;  %v598_v6 = vpop.f32.mrb[19].mxu1 }
 0x1fd   :  { %v658_v7 = vand.u32 2147483647, %v596_v2  ;;  %v599_v8 = vadd.f32 %v1528_v56, %v598_v6  ;;  %1176 = vmatpush3.bf16.xpose.msk.msra.mxu0 %vm1455_vm4, %v1174_v1 }
 0x1fe   :  { %v661_v9 = vand.u32 2147483647, %v607_v5  ;;  %v834_v10 = vsel %vm706_vm3, %v660_v4, 0.0  ;;  %1177 = vmatprep.subr.bf16.mxu0 %v1243_v29 }
 0x1ff   :  { %v659_v12 = vand.u32 2147483647, %v599_v8  ;;  %835 = vadd.xlane.f32.xlu1 %v834_v10  ;;  %v828_v13 = vsel %vm706_vm3, %v658_v7, 0.0 }
 0x200   :  { %829 = vadd.xlane.f32.xlu0 %v828_v13  ;;  %v837_v17 = vsel %vm706_vm3, %v661_v9, 0.0 }
 0x201   :  { %v1104_v14 = vpop.f32.mrb[20].mxu1  ;;  %v831_v20 = vsel %vm706_vm3, %v659_v12, 0.0 }
 0x202   :  { %v620_v15 = vadd.f32 %v1104_v14, %v1528_v56  ;;  %v611_v16 = vpop.f32.mrb[21].mxu1 }
 0x203   :  { %v612_v18 = vadd.f32 %v1528_v56, %v611_v16  ;;  %838 = vadd.xlane.f32.xlu1 %v837_v17  ;;  %v1105_v19 = vpop.f32.mrb[22].mxu1 }
 0x204   :  { %v664_v21 = vand.u32 2147483647, %v620_v15  ;;  %v623_v29 = vadd.f32 %v1105_v19, %v1528_v56  ;;  %v614_v22 = vpop.f32.mrb[23].mxu1  ;;  %832 = vadd.xlane.f32.xlu0 %v831_v20 }
 0x205   :  { %v615_v23 = vadd.f32 %v1528_v56, %v614_v22  ;;  %1180 = vmatpush3.bf16.xpose.msk.msra.mxu0 %vm1455_vm4, %v1178_v62  ;;  %v662_v28 = vand.u32 2147483647, %v612_v18 }
 0x206   :  { %v665_v24 = vand.u32 2147483647, %v623_v29  ;;  %v846_v27 = vsel %vm706_vm3, %v664_v21, 0.0 }
 0x207   :  { %v663_v32 = vand.u32 2147483647, %v615_v23  ;;  %v840_v35 = vsel %vm706_vm3, %v662_v28, 0.0 }
 0x208   :  { %847 = vadd.xlane.f32.xlu0 %v846_v27  ;;  %v849_v33 = vsel %vm706_vm3, %v665_v24, 0.0 }
 0x209   :  { %850 = vadd.xlane.f32.xlu1 %v849_v33  ;;  %v1108_v30 = vpop.f32.mrb[24].mxu1  ;;  %v843_v39 = vsel %vm706_vm3, %v663_v32, 0.0 }
 0x20a   :  { %v636_v59 = vadd.f32 %v1108_v30, %v1528_v56  ;;  %v627_v11 = vpop.f32.mrb[25].mxu1 }
 0x20b   :  { %v628_v34 = vadd.f32 %v1528_v56, %v627_v11  ;;  %v1109_v31 = vpop.f32.mrb[26].mxu1 }
 0x20c   :  { %v668_v53 = vand.u32 2147483647, %v636_v59  ;;  %v639_v36 = vadd.f32 %v1109_v31, %v1528_v56  ;;  %v630_v37 = vpop.f32.mrb[27].mxu1  ;;  %841 = vadd.xlane.f32.xlu0 %v840_v35  ;;  %1147 = vmatmul.mubr.msk.f32.vlgmr.msra.gmra.mrb[32].mxu0 %vm706_vm3, %v1246_v38 }
 0x20d   :  { %v631_v40 = vadd.f32 %v1528_v56, %v630_v37  ;;  %844 = vadd.xlane.f32.xlu1 %v843_v39  ;;  %v666_v43 = vand.u32 2147483647, %v628_v34 }
 0x20e   :  { %v669_v41 = vand.u32 2147483647, %v639_v36  ;;  %v858_v42 = vsel %vm706_vm3, %v668_v53, 0.0 }
 0x20f   :  { %v667_v45 = vand.u32 2147483647, %v631_v40  ;;  %v852_v52 = vsel %vm706_vm3, %v666_v43, 0.0 }
 0x210   :  { %859 = vadd.xlane.f32.xlu0 %v858_v42  ;;  %v861_v46 = vsel %vm706_vm3, %v669_v41, 0.0 }
 0x211   :  { %v1112_v47 = vpop.f32.mrb[28].mxu1  ;;  %862 = vadd.xlane.f32.xlu1 %v861_v46  ;;  %v855_v55 = vsel %vm706_vm3, %v667_v45, 0.0 }
 0x212   :  { %v643_v48 = vpop.f32.mrb[29].mxu1  ;;  %v652_v49 = vadd.f32 %v1112_v47, %v1528_v56 }
 0x213   :  { %v644_v50 = vadd.f32 %v1528_v56, %v643_v48  ;;  %v1113_v51 = vpop.f32.mrb[30].mxu1 }
 0x214   :  { %v646_v54 = vpop.f32.mrb[31].mxu1  ;;  %853 = vadd.xlane.f32.xlu0 %v852_v52  ;;  %v655_v57 = vadd.f32 %v1113_v51, %v1528_v56  ;;  %v672_v60 = vand.u32 2147483647, %v652_v49 }
 0x215   :  { %v670_v44 = vand.u32 2147483647, %v644_v50  ;;  %v647_v58 = vadd.f32 %v1528_v56, %v646_v54  ;;  %856 = vadd.xlane.f32.xlu1 %v855_v55 }
 0x216   :  { %v673_v63 = vand.u32 2147483647, %v655_v57  ;;  %v870_v1 = vsel %vm706_vm3, %v672_v60, 0.0 }
 0x217   :  { %v671_v61 = vand.u32 2147483647, %v647_v58  ;;  %v864_v62 = vsel %vm706_vm3, %v670_v44, 0.0 }
 0x218   :  { %865 = vadd.xlane.f32.xlu0 %v864_v62  ;;  %v873_v2 = vsel %vm706_vm3, %v673_v63, 0.0 }
 0x219   :  { %v867_v0 = vsel %vm706_vm3, %v671_v61, 0.0 }
 0x21a   :  { %868 = vadd.xlane.f32.xlu1 %v867_v0 }
 0x21c   :  { %871 = vadd.xlane.f32.xlu0 %v870_v1 }
 0x21e   :  { %874 = vadd.xlane.f32.xlu1 %v873_v2 }
 0x28c   :  { %v836_v4 = vpop.xlane.xlu1 %835 }
 0x28d   :  { %v830_v3 = vpop.xlane.xlu0 %829 }
 0x290   :  { %v839_v56 = vpop.xlane.xlu1 %838 }
 0x291   :  { %v833_v5 = vpop.xlane.xlu0 %832 }
 0x295   :  { %v848_v6 = vpop.xlane.xlu0 %847 }
 0x296   :  { %v851_v7 = vpop.xlane.xlu1 %850 }
 0x299   :  { %v842_v8 = vpop.xlane.xlu0 %841 }
 0x29a   :  { %v845_v9 = vpop.xlane.xlu1 %844 }
 0x29d   :  { %v860_v10 = vpop.xlane.xlu0 %859 }
 0x29e   :  { %v863_v12 = vpop.xlane.xlu1 %862 }
 0x2a1   :  { %v854_v13 = vpop.xlane.xlu0 %853 }
 0x2a2   :  { %v857_v14 = vpop.xlane.xlu1 %856 }
 0x2a5   :  { %v866_v15 = vpop.xlane.xlu0 %865 }
 0x2a7   :  { %v869_v16 = vpop.xlane.xlu1 %868 }
 0x2a9   :  { %v872_v32 = vpop.xlane.xlu0 %871 }
 0x2ab   :  { %v875_v33 = vpop.xlane.xlu1 %874 }
 0x2df   :  { %v824_v17 = vpop.f32.mrb[32].mxu0 }
 0x2e0   :  { %v879_v18 = vrot.slane %v824_v17, %v48_v26  ;;  %v1148_v19 = vpop.f32.mrb[33].mxu0 }
 0x2e2   :  { %v880_v20 = vadd.f32 %v879_v18, %v830_v3  ;;  %v881_v21 = vadd.f32 %v879_v18, %v833_v5  ;;  %v882_v29 = vadd.f32 %v879_v18, %v836_v4  ;;  %v883_v22 = vadd.f32 %v879_v18, %v839_v56 }
 0x2e3   :  { %v884_v23 = vadd.f32 %v879_v18, %v842_v8  ;;  %v885_v24 = vadd.f32 %v879_v18, %v845_v9  ;;  %v886_v27 = vadd.f32 %v879_v18, %v848_v6  ;;  %v887_v28 = vadd.f32 %v879_v18, %v851_v7 }
 0x2e4   :  { %v888_v30 = vadd.f32 %v879_v18, %v854_v13  ;;  %v889_v59 = vadd.f32 %v879_v18, %v857_v14  ;;  %v890_v11 = vadd.f32 %v879_v18, %v860_v10  ;;  %v891_v34 = vadd.f32 %v879_v18, %v863_v12  ;;  %896 = vst [vmem:[#allocation2] sm:$0xff] %v880_v20 }
 0x2e5   :  { %897 = vst [vmem:[#allocation2 + $0x8] sm:$0xff] %v881_v21  ;;  %898 = vst [vmem:[#allocation2 + $0x10] sm:$0xff] %v882_v29  ;;  %v892_v25 = vadd.f32 %v879_v18, %v866_v15  ;;  %v893_v26 = vadd.f32 %v879_v18, %v869_v16  ;;  %v894_v31 = vadd.f32 %v879_v18, %v872_v32 }
 0x2e6   :  { %899 = vst [vmem:[#allocation2 + $0x18] sm:$0xff] %v883_v22  ;;  %v895_v35 = vadd.f32 %v879_v18, %v875_v33  ;;  %900 = vst [vmem:[#allocation2 + $0x20] sm:$0xff] %v884_v23 }
 0x2e7   :  { %901 = vst [vmem:[#allocation2 + $0x28] sm:$0xff] %v885_v24  ;;  %902 = vst [vmem:[#allocation2 + $0x30] sm:$0xff] %v886_v27 }
 0x2e8   :  { %903 = vst [vmem:[#allocation2 + $0x38] sm:$0xff] %v887_v28  ;;  %904 = vst [vmem:[#allocation2 + $0x40] sm:$0xff] %v888_v30 }
 0x2e9   :  { %905 = vst [vmem:[#allocation2 + $0x48] sm:$0xff] %v889_v59  ;;  %906 = vst [vmem:[#allocation2 + $0x50] sm:$0xff] %v890_v11 }
 0x2ea   :  { %907 = vst [vmem:[#allocation2 + $0x58] sm:$0xff] %v891_v34  ;;  %908 = vst [vmem:[#allocation2 + $0x60] sm:$0xff] %v892_v25 }
 0x2eb   :  { %909 = vst [vmem:[#allocation2 + $0x68] sm:$0xff] %v893_v26  ;;  %910 = vst [vmem:[#allocation2 + $0x70] sm:$0xff] %v894_v31 }
 0x2ec   :  { %911 = vst [vmem:[#allocation2 + $0x78] sm:$0xff] %v895_v35 }
 0x2ed   :  { %1229 = shalt.err (!%p1226_p4)
}
 0x2ee   :  { %s1230_s9 = scalar_lea.hbm %s1595_s6, 2048 }
 0x2ef   :  { %p1231_p5 = scmp.ne.s32.totalorder %s1595_s6, %s1230_s9  ;;  %p1234_p6 = scmp.lt.u32.totalorder %s1230_s9, %s1595_s6 }
 0x2f1   :  { %p1236_p7 = pnand %p1234_p6, %p1231_p5 }
 0x2f3   :  { %1239 = shalt.err (!%p1236_p7)
}
 0x2f4   :  { %s1248_s13 = smov 128   ;;  %s1249_s14 = smov 8  }
 0x2f5   :  { %923 = dma.vmem_to_hbm [thread:$0]  %s1570_s5, 2048, %s1595_s6, [#allocation3], %s1248_s13, %s1248_s13, %s1249_s14  }
 0x2f6   :  { %1240 = dma.done.wait [#allocation3], 2048  }
 0x2f7   :  { %1241 = vsyncadd [#allocation3], 4294965248 }
 0x2f8   :  { %927 = vsyncpa [#allocation3], 1 }

</bundles_post_ra>
